<compile_context>
chip_gen: v6e
topology: v6e:2x2x1
jax: 0.10.0
libtpu: 0.0.40
codegen_flags: <defaults>
</compile_context>

<pallas_src>
import math

import jax
import jax.numpy as jnp
from jax.experimental import pallas as pl
from jax.experimental.pallas import tpu as pltpu


LANE = 128


def _round_up(x, m):
    return ((x + m - 1) // m) * m


def _cdiv(a, b):
    return -(-a // b)


def _vmem_capacity_bytes():
    """Physical VMEM per TensorCore (generation-aware; conservative fallback)."""
    try:
        info = pltpu.get_tpu_info()
        cap = int(getattr(info, "vmem_capacity_bytes", 0) or 0)
        if cap > 0:
            return cap
    except Exception:
        pass
    return 64 << 20  # v7x-sized fallback: safe on every generation


def siren_kernel(x_ref, wt_ref, b_ref, o_ref):
    # x_ref : (tm, dim_in)   VMEM (bf16 or f32)
    # wt_ref: (dim_in, tn)   VMEM (pre-transposed, w0 pre-folded)
    # b_ref : (1, tn)        VMEM (w0 pre-folded, f32)
    # o_ref : (tm, tn)       VMEM (tn % 128 == 0 -> lane-dense stores)
    pre = jnp.dot(x_ref[...], wt_ref[...], preferred_element_type=jnp.float32)
    pre = pre + b_ref[...]                       # bias already f32
    o_ref[...] = jnp.sin(pre).astype(o_ref.dtype)


def prepare_siren_params(weight, bias, *, w0=30.0, compute_dtype=jnp.bfloat16,
                         pad_in_to=None):
    """One-time parameter prep (NOT in the per-forward path).

    Transpose to (dim_in, dim_out), fold w0 into W and b, pad dim_out to a
    multiple of 128 (lane-dense stores). `pad_in_to` zero-pads the input
    dimension so this layer can consume a previous layer's padded
    (keep_padded=True) activations directly."""
    dim_out, dim_in = weight.shape
    dim_out_p = _round_up(dim_out, LANE)
    dim_in_p = dim_in if pad_in_to is None else max(int(pad_in_to), dim_in)

    wt = (w0 * weight.astype(jnp.float32)).T                 # (dim_in, dim_out)
    if compute_dtype is not None:
        wt = wt.astype(compute_dtype)
    wt = jnp.pad(wt, ((0, dim_in_p - dim_in), (0, dim_out_p - dim_out)))

    if bias is None:
        b = jnp.zeros((dim_out,), jnp.float32)
    else:
        b = w0 * bias.astype(jnp.float32)
    b2d = jnp.pad(b, (0, dim_out_p - dim_out)).reshape(1, dim_out_p)

    return wt, b2d, dim_out


def siren_forward(x, wt, b2d, dim_out, *, compute_dtype=jnp.bfloat16,
                  out_dtype=None, keep_padded=False, tm=None, tn=None,
                  target_step_bytes=4 << 20):
    """x: (B, dim_in); wt: (dim_in, dim_out_p); b2d: (1, dim_out_p)."""
    B, dim_in = x.shape
    dim_in_w, dim_out_p = wt.shape
    assert dim_in == dim_in_w, (dim_in, dim_in_w)
    assert dim_out_p % LANE == 0

    out_dtype = out_dtype or x.dtype
    if compute_dtype is not None and x.dtype != compute_dtype:
        x = x.astype(compute_dtype)

    in_isz = jnp.dtype(x.dtype).itemsize
    out_isz = jnp.dtype(out_dtype).itemsize
    w_isz = jnp.dtype(wt.dtype).itemsize

    vmem_cap = _vmem_capacity_bytes()
    usable = max(16 << 20, vmem_cap - (8 << 20))  # leave compiler headroom

    # --- N tiling: keep the whole weight resident unless it is large
    #     relative to VMEM (or the caller asks), then tile dim_out_p. ---
    if tn is None:
        if dim_in * dim_out_p * w_isz <= usable // 4:
            tn = dim_out_p
        else:
            tn = max(LANE, (usable // 8) // max(dim_in * w_isz, 1) // LANE * LANE)
            tn = min(tn, dim_out_p)
            while dim_out_p % tn != 0:
                tn -= LANE
    tn = min(int(tn), dim_out_p)
    assert tn % LANE == 0 and dim_out_p % tn == 0
    n_n = dim_out_p // tn

    # --- M tiling: scale tm with the output width (~target_step_bytes of
    #     output per grid step), keep >= 2 grid steps when the batch allows
    #     (v7x has 2 TensorCores on the "parallel" axis), and avoid a
    #     near-empty last tile. ---
    B8 = _round_up(max(B, 1), 8)
    if tm is None:
        tm = max(512, (target_step_bytes // max(tn * out_isz, 1)) // 8 * 8)
        tm = min(tm, 8192)
    tm = max(8, min(_round_up(int(tm), 8), B8))
    n_m = _cdiv(B8, tm)
    if B8 >= 16:
        n_m = max(n_m, 2)
    tm = _round_up(_cdiv(B8, n_m), 8)

    # Shrink tm if the double-buffered tiles + resident weight overflow VMEM.
    def _footprint(t):
        w_bufs = 1 if n_n == 1 else 2
        return (2 * t * dim_in * in_isz            # double-buffered x tiles
                + 2 * t * tn * out_isz             # double-buffered out tiles
                + w_bufs * dim_in * tn * w_isz     # weight
                + w_bufs * tn * 4                  # bias (f32)
                + (2 << 20))                       # slack
    while tm > 8 and _footprint(tm) > usable:
        tm = _round_up(max(tm // 2, 8), 8)
    n_m = _cdiv(B8, tm)

    B_pad = n_m * tm
    if B_pad != B:
        x = jnp.pad(x, ((0, B_pad - B), (0, 0)))

    vmem_bytes = int(min(max(_footprint(tm), 16 << 20), usable))

    if n_n == 1:
        # grid-invariant operands: single-buffer so they don't double VMEM use
        w_spec = pl.BlockSpec((dim_in, tn), lambda i, j: (0, j),
                              pipeline_mode=pl.Buffered(1))
        b_spec = pl.BlockSpec((1, tn), lambda i, j: (0, j),
                              pipeline_mode=pl.Buffered(1))
    else:
        w_spec = pl.BlockSpec((dim_in, tn), lambda i, j: (0, j))
        b_spec = pl.BlockSpec((1, tn), lambda i, j: (0, j))

    out_p = pl.pallas_call(
        siren_kernel,
        out_shape=jax.ShapeDtypeStruct((B_pad, dim_out_p), out_dtype),
        grid_spec=pltpu.PrefetchScalarGridSpec(
            num_scalar_prefetch=0,
            grid=(n_m, n_n),
            in_specs=[
                pl.BlockSpec((tm, dim_in), lambda i, j: (i, 0)),
                w_spec,
                b_spec,
            ],
            out_specs=pl.BlockSpec((tm, tn), lambda i, j: (i, j)),
        ),
        compiler_params=pltpu.CompilerParams(
            dimension_semantics=("parallel", "parallel"),
            vmem_limit_bytes=vmem_bytes),
    )(x, wt, b2d)

    if keep_padded:
        # Chained use: padded columns are exactly sin(0)=0; prepare the next
        # layer with pad_in_to=dim_out_p and slice once at the end instead of
        # paying an extra HBM read+write per layer.
        return out_p
    return out_p[:B, :dim_out]


def init_siren_params(key, dim_in, dim_out, *, w0=30.0, c=6.0, is_first=False,
                      dtype=jnp.float32):
    w_std = (1.0 / dim_in) if is_first else (math.sqrt(c / dim_in) / w0)
    kw, kb = jax.random.split(key)
    weight = jax.random.uniform(kw, (dim_out, dim_in), dtype=dtype,
                                minval=-w_std, maxval=w_std)
    bias = jax.random.uniform(kb, (dim_out,), dtype=dtype,
                              minval=-w_std, maxval=w_std)
    return weight, bias


if __name__ == "__main__":
    key = jax.random.PRNGKey(0)
    ks = jax.random.split(key, 8)
    w0 = 30.0
    f32 = jnp.float32
    bf16 = jnp.bfloat16

    # --- 1) small exact-f32 check (matches the PyTorch module defaults) ----
    B1, din1, dout1 = 8, 16, 32
    x1 = jax.random.normal(ks[0], (B1, din1), dtype=f32)
    W1, b1 = init_siren_params(ks[1], din1, dout1, w0=w0, is_first=False)
    wt1, bb1, _ = prepare_siren_params(W1, b1, w0=w0, compute_dtype=None)
    y1 = jax.block_until_ready(
        siren_forward(x1, wt1, bb1, dout1, compute_dtype=None))
    ref1 = jnp.sin(w0 * (x1 @ W1.T + b1))
    assert y1.shape == (B1, dout1)
    assert jnp.allclose(y1, ref1, atol=1e-4, rtol=1e-4), "mismatch (f32 path)"

    # --- 2) ragged batch, multi-tile grid, default bf16 compute ------------
    B2, din2, dout2 = 300, 64, 48
    x2 = jax.random.normal(ks[2], (B2, din2), dtype=f32)
    W2, b2 = init_siren_params(ks[3], din2, dout2, w0=w0, is_first=True)
    wt2, bb2, _ = prepare_siren_params(W2, b2, w0=w0)          # bf16 weights
    y2 = jax.block_until_ready(siren_forward(x2, wt2, bb2, dout2))
    xb = x2.astype(bf16).astype(f32)
    wb = (w0 * W2.astype(f32)).T.astype(bf16).astype(f32)
    ref2 = jnp.sin(xb @ wb + w0 * b2)
    assert y2.shape == (B2, dout2)
    assert jnp.allclose(y2, ref2, atol=5e-3, rtol=0), "mismatch (bf16 path)"

    # --- 3) two-layer chain: padded layout kept between layers, N tiling ---
    B3, din3, hid3, dout3 = 1000, 2, 200, 3
    x3 = jax.random.normal(ks[4], (B3, din3), dtype=f32)
    WA, bA = init_siren_params(ks[5], din3, hid3, w0=w0, is_first=True)
    WB, bB = init_siren_params(ks[6], hid3, dout3, w0=w0, is_first=False)
    wtA, bbA, _ = prepare_siren_params(WA, bA, w0=w0)
    hid_p = wtA.shape[1]                                       # 256
    wtB, bbB, _ = prepare_siren_params(WB, bB, w0=w0, pad_in_to=hid_p)
    hA = siren_forward(x3, wtA, bbA, hid3, out_dtype=bf16,
                       keep_padded=True, tn=128)               # (B_pad, 256)
    y3 = siren_forward(hA, wtB, bbB, dout3, out_dtype=f32)[:B3]
    y3 = jax.block_until_ready(y3)
    x3b = x3.astype(bf16).astype(f32)
    wAb = (w0 * WA.astype(f32)).T.astype(bf16).astype(f32)
    hAr = jnp.sin(x3b @ wAb + w0 * bA).astype(bf16).astype(f32)
    wBb = (w0 * WB.astype(f32)).T.astype(bf16).astype(f32)
    ref3 = jnp.sin(hAr @ wBb + w0 * bB)
    assert y3.shape == (B3, dout3)
    assert jnp.allclose(y3, ref3, atol=1e-2, rtol=0), "mismatch (chained path)"

    print("KERNEL_OK")
</pallas_src>

<mosaic_0001>
module attributes {stable_mosaic.version = 11 : i64} {
  func.func @siren_kernel(%arg0: i32, %arg1: i32, %arg2: memref<8x16xf32, #tpu.memory_space<vmem>>, %arg3: memref<16x128xf32, #tpu.memory_space<vmem>>, %arg4: memref<1x128xf32, #tpu.memory_space<vmem>>, %arg5: memref<8x128xf32, #tpu.memory_space<vmem>>) attributes {dimension_semantics = [#tpu.dimension_semantics<parallel>, #tpu.dimension_semantics<parallel>], iteration_bounds = array<i64: 1, 1>, scalar_prefetch = 0 : i64, scratch_operands = 0 : i64, tpu.core_type = #tpu.core_type<tc>, window_params = [{transform_indices = @transform_0, window_bounds = array<i64: 8, 16>}, {pipeline_mode = #tpu.pipeline_mode<synchronous>, transform_indices = @transform_1, window_bounds = array<i64: 16, 128>}, {pipeline_mode = #tpu.pipeline_mode<synchronous>, transform_indices = @transform_2, window_bounds = array<i64: 1, 128>}, {transform_indices = @transform_3, window_bounds = array<i64: 8, 128>}]} {
    %c0 = arith.constant 0 : index
    %c0_0 = arith.constant 0 : index
    %0 = vector.load %arg2[%c0, %c0_0] : memref<8x16xf32, #tpu.memory_space<vmem>>, vector<8x16xf32>
    %c0_1 = arith.constant 0 : index
    %c0_2 = arith.constant 0 : index
    %1 = vector.load %arg3[%c0_1, %c0_2] : memref<16x128xf32, #tpu.memory_space<vmem>>, vector<16x128xf32>
    %cst = arith.constant dense<0.000000e+00> : vector<8x128xf32>
    %2 = tpu.matmul %0, %1, %cst {dimension_numbers = #tpu.dot_dimension_numbers<[1], [0], [0], [1], [0, 0, 1, 1], [], []>} : vector<8x16xf32>, vector<16x128xf32>, vector<8x128xf32> -> vector<8x128xf32>
    %c0_3 = arith.constant 0 : index
    %c0_4 = arith.constant 0 : index
    %3 = vector.load %arg4[%c0_3, %c0_4] : memref<1x128xf32, #tpu.memory_space<vmem>>, vector<1x128xf32>
    %4 = vector.broadcast %3 : vector<1x128xf32> to vector<8x128xf32>
    %5 = arith.addf %2, %4 : vector<8x128xf32>
    %6 = math.sin %5 : vector<8x128xf32>
    %c0_5 = arith.constant 0 : index
    %c0_6 = arith.constant 0 : index
    %7 = vector.load %arg5[%c0_5, %c0_6] : memref<8x128xf32, #tpu.memory_space<vmem>>, vector<8x128xf32>
    tpu.vector_store %arg5[%c0_5, %c0_6], %6 {strides = array<i32>} : memref<8x128xf32, #tpu.memory_space<vmem>>, vector<8x128xf32>,
    return
  }
  func.func @transform_0(%arg0: i32, %arg1: i32) -> (i32, i32) {
    %c0_i32 = arith.constant 0 : i32
    %c0_i32_0 = arith.constant 0 : i32
    return %arg0, %c0_i32 : i32, i32
  }
  func.func @transform_1(%arg0: i32, %arg1: i32) -> (i32, i32) {
    %c0_i32 = arith.constant 0 : i32
    %c0_i32_0 = arith.constant 0 : i32
    return %c0_i32, %arg1 : i32, i32
  }
  func.func @transform_2(%arg0: i32, %arg1: i32) -> (i32, i32) {
    %c0_i32 = arith.constant 0 : i32
    %c0_i32_0 = arith.constant 0 : i32
    return %c0_i32, %arg1 : i32, i32
  }
  func.func @transform_3(%arg0: i32, %arg1: i32) -> (i32, i32) {
    %c0_i32 = arith.constant 0 : i32
    return %arg0, %arg1 : i32, i32
  }
}

</mosaic_0001>

<bundles_post_ra>
// kernel: tpu_custom_call.1
= control target key start
LH: loop header
LB: loop body
LE: loop exit
PB: predicated region body
PF: predicated region fallthrough
CT: control target
= control target key end

     0   :  { %8 = vsyncpa [#allocation3], 0  ;;  %s415_s0 = inlined_call_operand.hbm [shape: f32[8,16], index: 0, kind: input, shape index: {}]   ;;  %s416_s1 = inlined_call_operand.hbm [shape: f32[16,128], index: 1, kind: input, shape index: {}]   ;;  %s417_s2 = inlined_call_operand.vmem [shape: f32[1,128], index: 2, kind: input, shape index: {}]   ;;  %s418_s3 = inlined_call_operand.hbm [shape: f32[8,128], index: 3, kind: output, shape index: {}]  }
   0x1   :  { %9 = vsyncpa [#allocation6], 0 }
   0x2   :  { %10 = vsyncpa [#allocation4], 0  ;;  %s349_s12 = smov [#allocation2]   ;;  %s350_s14 = smov [#allocation5]  }
   0x3   :  { %s17_s13 = sshll.u32 %s349_s12, 4  ;;  %s26_s15 = sshll.u32 %s350_s14, 4  ;;  %s18_s13 = int_to_ptr.vmem [resolvable:$true] %s17_s13  ;;  %s27_s15 = int_to_ptr.vmem [resolvable:$true] %s26_s15 }
   0x4   :  { %s291_s16 = scalar_lea.vmem %s18_s13, 128  ;;  %p296_p1 = scmp.lt.s32.totalorder %s18_s13, %s18_s13 }
   0x5   :  { %p292_p0 = scmp.ne.s32.totalorder %s18_s13, %s291_s16  ;;  %p297_p2 = scmp.lt.s32.totalorder %s291_s16, %s291_s16 }
   0x7   :  { %p298_p3 = por %p297_p2, %p296_p1 }
   0x9   :  { %p299_p4 = pnand %p298_p3, %p292_p0 }
   0xb   :  { %302 = shalt.err (!%p299_p4)
}
   0xc   :  { %20 = dma.hbm_to_vmem [thread:$0]  %s415_s0, 128, %s18_s13, [#allocation3]  }
   0xd   :  { %s311_s19 = scalar_lea.vmem %s27_s15, 256  ;;  %p316_p6 = scmp.lt.s32.totalorder %s27_s15, %s27_s15 }
   0xe   :  { %p312_p5 = scmp.ne.s32.totalorder %s27_s15, %s311_s19  ;;  %p317_p7 = scmp.lt.s32.totalorder %s311_s19, %s311_s19 }
  0x10   :  { %p318_p8 = por %p317_p7, %p316_p6 }
  0x12   :  { %p319_p9 = pnand %p318_p8, %p312_p5 }
  0x14   :  { %322 = shalt.err (!%p319_p9)
}
  0x15   :  { %s351_s20 = smov 128   ;;  %s352_s21 = smov 8  }
  0x16   :  { %32 = dma.hbm_to_vmem [thread:$0]  %s416_s1, 256, %s27_s15, [#allocation6], %s351_s20, %s351_s20, %s352_s21  }
  0x17   :  { %343 = dma.done.wait [#allocation3], 128  }
  0x18   :  { %344 = vsyncadd [#allocation3], 4294967168 }
  0x19   :  { %345 = dma.done.wait [#allocation6], 256  }
  0x1a   :  { %346 = vsyncadd [#allocation6], 4294967040  ;;  %v353_v0 = vmov 0.0   ;;  %vm354_vm0 = vmmov 0   ;;  %v43_v1 = vld [vmem:[#allocation5 + $0x8] sm:$0xff]  ;;  %v42_v2 = vld [vmem:[#allocation5] sm:$0xff] }
  0x1b   :  { %255 = vmatprep.subr.mxu0 %v353_v0  ;;  %259 = vmatprep.mubr.msk.f32.mxu0 %vm354_vm0, %v353_v0  ;;  %v41_v3 = vld [vmem:[#allocation2] sm:$0xff]  ;;  %vm51_vm1 = vcmask 130048   ;;  %v355_v18 = vmov 683565275   ;;  %v356_v20 = vmov 2475754826  }
  0x1c   :  { %256 = vmatpush3.msra.mxu0 %v43_v1  ;;  %v246_v4 = vld [vmem:[%s417_s2] ss:$0 sm:$0xff]  ;;  %v357_v23 = vmov 2131351028   ;;  %v358_v26 = vmov 2102212464  }
  0x1d   :  { %257 = vmatprep.subr.mxu0 %v353_v0  ;;  %v359_v29 = vmov 920167782   ;;  %v360_v32 = vmov 1326507024   ;;  %s361_s1 = smov [#allocation7]  }
  0x1e   :  { %258 = vmatpush3.msra.mxu0 %v42_v2  ;;  %s236_s2 = sshll.u32 %s361_s1, 4  ;;  %s237_s2 = int_to_ptr.vmem [resolvable:$true] %s236_s2 }
  0x1f   :  { %260 = vmatmul.mubr.msk.f32.vlgmr.msra.gmra.mxu0 %vm51_vm1, %v41_v3  ;;  %s323_s25 = scalar_lea.vmem %s237_s2, 128  ;;  %p328_p11 = scmp.lt.s32.totalorder %s237_s2, %s237_s2 }
  0x20   :  { %p324_p10 = scmp.ne.s32.totalorder %s237_s2, %s323_s25  ;;  %p329_p12 = scmp.lt.s32.totalorder %s323_s25, %s323_s25 }
  0x22   :  { %p330_p13 = por %p329_p12, %p328_p11 }
  0x24   :  { %p331_p0 = pnand %p330_p13, %p324_p10 }
  0xdf   :  { %v121_v5 = vpop.f32.mrf.mxu0 }
  0xe0   :  { %v391_v6 = vadd.f32 %v246_v4, %v121_v5 }
  0xe1   :  { %v261_v7 = vpop.f32.mrf.mxu0 }
  0xe2   :  { %v128_v8 = vand.u32 2139095040, %v391_v6  ;;  %v125_v12 = vand.u32 2147483647, %v391_v6  ;;  %vm127_vm9 = vcmp.lt.s32.totalorder %v391_v6, 0  ;;  %vm217_vm14 = vweird.f32 %v391_v6 }
  0xe4   :  { %v129_v9 = vshrl.u32 %v128_v8, 23  ;;  %v132_v15 = vand.u32 8388607, %v125_v12  ;;  %vm126_vm10 = vcmp.le.f32.partialorder %v125_v12, 0.7853982 }
  0xe6   :  { %v248_v10 = vadd.s32 4294967169, %v129_v9  ;;  %v133_v34 = vor.u32 8388608, %v132_v15 }
  0xe8   :  { %v135_v11 = vadd.s32 1, %v248_v10  ;;  %v173_v48 = vshll.u32 %v133_v34, 8 }
  0xea   :  { %vm136_vm2 = vcmp.gt.s32.totalorder %v135_v11, 0 }
  0xeb   :  { %v137_v13 = vsel %vm136_vm2, %v135_v11, 0 }
  0xec   :  { %v139_v14 = vand.u32 31, %v137_v13  ;;  %v138_v17 = vshrl.u32 %v137_v13, 5 }
  0xee   :  { %v140_v16 = vsub.s32 32, %v139_v14  ;;  %v142_v19 = vshll.u32 %v355_v18, %v139_v14  ;;  %v145_v21 = vshll.u32 %v356_v20, %v139_v14  ;;  %v148_v25 = vshll.u32 %v357_v23, %v139_v14 }
  0xef   :  { %v151_v28 = vshll.u32 %v358_v26, %v139_v14  ;;  %v154_v31 = vshll.u32 %v359_v29, %v139_v14  ;;  %vm157_vm3 = vcmp.lt.s32.totalorder %v138_v17, 1  ;;  %vm160_vm4 = vcmp.lt.s32.totalorder %v138_v17, 4 }
  0xf0   :  { %v143_v22 = vshrl.u32 %v356_v20, %v140_v16  ;;  %v146_v24 = vshrl.u32 %v357_v23, %v140_v16  ;;  %v149_v27 = vshrl.u32 %v358_v26, %v140_v16  ;;  %v152_v30 = vshrl.u32 %v359_v29, %v140_v16 }
  0xf1   :  { %v155_v33 = vshrl.u32 %v360_v32, %v140_v16  ;;  %v141_v43 = vshrl.u32 %v355_v18, %v140_v16  ;;  %vm159_vm5 = vcmp.lt.s32.totalorder %v138_v17, 3  ;;  %vm158_vm6 = vcmp.lt.s32.totalorder %v138_v17, 2 }
  0xf2   :  { %v144_v35 = vor.u32 %v143_v22, %v142_v19  ;;  %v147_v36 = vor.u32 %v146_v24, %v145_v21  ;;  %v150_v37 = vor.u32 %v149_v27, %v148_v25  ;;  %v153_v38 = vor.u32 %v152_v30, %v151_v28 }
  0xf3   :  { %v156_v39 = vor.u32 %v155_v33, %v154_v31 }
  0xf4   :  { %v162_v40 = vsel %vm160_vm4, %v150_v37, 2102212464  ;;  %v165_v41 = vsel %vm157_vm3, %v144_v35, %v147_v36  ;;  %v169_v42 = vsel %vm157_vm3, %v147_v36, %v150_v37  ;;  %v166_v44 = vsel %vm160_vm4, %v153_v38, 920167782 }
  0xf5   :  { %v170_v45 = vsel %vm160_vm4, %v156_v39, 1326507024  ;;  %v167_v46 = vsel %vm159_vm5, %v150_v37, %v166_v44  ;;  %v161_v49 = vsel %vm157_vm3, %v141_v43, %v144_v35  ;;  %v163_v50 = vsel %vm159_vm5, %v147_v36, %v162_v40 }
  0xf6   :  { %v171_v47 = vsel %vm159_vm5, %v153_v38, %v170_v45  ;;  %v168_v51 = vsel %vm158_vm6, %v165_v41, %v167_v46  ;;  %v164_v57 = vsel %vm158_vm6, %v161_v49, %v163_v50 }
  0xf7   :  { %v172_v52 = vsel %vm158_vm6, %v169_v42, %v171_v47  ;;  %v400_v55 = vmul.u32.u64.low %v173_v48, %v168_v51  ;;  %v401_v56 = vmul.u32.u64.high %v173_v48, %v168_v51, %v400_v55  ;;  %v180_v59 = vmul.u32 %v173_v48, %v164_v57 }
  0xf8   :  { %v397_v53 = vmul.u32.u64.low %v173_v48, %v172_v52  ;;  %v398_v54 = vmul.u32.u64.high %v173_v48, %v172_v52, %v397_v53 }
  0xf9   :  { %v183_v58 = vadd.s32 1, %v401_v56 }
  0xfa   :  { %vm182_vm7 = vc.u32 %v398_v54, %v400_v55  ;;  %v181_v8 = vadd.s32 %v400_v55, %v398_v54 }
  0xfb   :  { %v184_v60 = vsel %vm182_vm7, %v183_v58, %v401_v56 }
  0xfc   :  { %v185_v61 = vadd.s32 %v184_v60, %v180_v59 }
  0xfe   :  { %v186_v62 = vadd.s32 536870912, %v185_v61 }
 0x100   :  { %v187_v63 = vshrl.u32 %v186_v62, 30 }
 0x102   :  { %v188_v0 = vshll.u32 %v187_v63, 30  ;;  %v211_v22 = vsub.s32 4, %v187_v63 }
 0x104   :  { %v189_v1 = vsub.s32 %v185_v61, %v188_v0  ;;  %v212_v25 = vsel %vm127_vm9, %v211_v22, %v187_v63 }
 0x105   :  { %v214_v26 = vsel %vm126_vm10, 0, %v212_v25 }
 0x106   :  { %v191_v2 = vsub.s32 0, %v189_v1  ;;  %v218_v27 = vadd.s32 3, %v214_v26 }
 0x108   :  { %v249_v3 = vmin.u32 %v191_v2, %v189_v1  ;;  %v219_v28 = vand.u32 3, %v218_v27 }
 0x10a   :  { %v193_v4 = vclz %v249_v3  ;;  %vm224_vm11 = vcmp.eq.s32.totalorder %v219_v28, 2  ;;  %vm221_vm12 = vcmp.eq.s32.totalorder %v219_v28, 0  ;;  %vm220_vm13 = vcmp.lt.s32.totalorder %v219_v28, 2 }
 0x10c   :  { %v250_v5 = vadd.s32 4294967294, %v193_v4 }
 0x10e   :  { %vm251_vm8 = vcmp.lt.s32.totalorder %v250_v5, 0 }
 0x10f   :  { %v196_v7 = vsel %vm251_vm8, 0, %v250_v5 }
 0x110   :  { %v197_v9 = vsub.s32 32, %v196_v7  ;;  %v201_v10 = vsub.s32 4294967266, %v196_v7  ;;  %v198_v11 = vshll.u32 %v189_v1, %v196_v7 }
 0x112   :  { %v199_v13 = vshrl.u32 %v181_v8, %v197_v9  ;;  %v202_v14 = vadd.s32 127, %v201_v10 }
 0x114   :  { %v200_v15 = vor.u32 %v199_v13, %v198_v11  ;;  %v203_v16 = vshll.u32 %v202_v14, 23 }
 0x116   :  { %v204_v17 = vor.u32 4788187, %v203_v16  ;;  %v207_v19 = vcvt.s32.f32 %v200_v15 }
 0x118   :  { %v205_v18 = vand.u32 2147483647, %v204_v17 }
 0x11a   :  { %v208_v20 = vmul.f32 %v207_v19, %v205_v18 }
 0x11c   :  { %v209_v21 = vxor.u32 2147483648, %v208_v20 }
 0x11e   :  { %v210_v23 = vsel %vm127_vm9, %v209_v21, %v208_v20 }
 0x11f   :  { %v213_v24 = vsel %vm126_vm10, %v391_v6, %v210_v23 }
 0x120   :  { %279 = vcosq.f32 %v213_v24 }
 0x121   :  { %281 = vsinq.f32 %v213_v24 }
 0x12d   :  { %v280_v29 = vpop.eup %279 }
 0x12e   :  { %v282_v30 = vpop.eup %281  ;;  %v225_v31 = vxor.u32 2147483648, %v280_v29 }
 0x12f   :  { %v222_v32 = vxor.u32 2147483648, %v282_v30 }
 0x130   :  { %v226_v33 = vsel %vm224_vm11, %v225_v31, %v282_v30 }
 0x131   :  { %v223_v34 = vsel %vm221_vm12, %v280_v29, %v222_v32 }
 0x132   :  { %v227_v12 = vsel %vm220_vm13, %v223_v34, %v226_v33 }
 0x133   :  { %v228_v35 = vsel %vm217_vm14, nan, %v227_v12 }
 0x134   :  { %229 = vst [vmem:[#allocation7] sm:$0xff] %v228_v35 }
 0x135   :  { %334 = shalt.err (!%p331_p0)
}
 0x136   :  { %239 = dma.vmem_to_hbm [thread:$0]  %s237_s2, 128, %s418_s3, [#allocation4]  }
 0x137   :  { %347 = dma.done.wait [#allocation4], 128  }
 0x138   :  { %348 = vsyncadd [#allocation4], 4294967168 }
 0x139   :  { %243 = vsyncpa [#allocation3], 1 }
 0x13a   :  { %244 = vsyncpa [#allocation6], 1 }
 0x13b   :  { %245 = vsyncpa [#allocation4], 1 }

</bundles_post_ra>
